<compile_context>
chip_gen: v7x
topology: tpu7x:2x2x1
jax: 0.10.0
libtpu: 0.0.40
codegen_flags: <defaults>
</compile_context>

<pallas_src>
import functools

import jax
import jax.numpy as jnp
from jax import lax
from jax.experimental import pallas as pl
from jax.experimental.pallas import tpu as pltpu


def repeat_linear_kernel(x_ref, w_ref, wl_ref, b_ref, o_ref, acc_ref, *,
                         sg_valid, bs, mask_seq_tail):
    # x_ref  : (bm, bs, Dp)  VMEM  lane-packed input tile
    # w_ref  : (1, Dp)       VMEM  per-feature scale (self.w, lane-tiled), resident
    # wl_ref : (Dp, Dop)     VMEM  linear weight (stacked, transposed, 1/S folded), resident
    # b_ref  : (1, Dop)      VMEM  linear bias (zero-padded to Dop), resident
    # o_ref  : (bm, Dop)     VMEM  output block (resident across the reduction axis)
    # acc_ref: (bm, Dp) f32  VMEM  scratch accumulator (sum over sequence)
    k = pl.program_id(1)

    @pl.when(k == 0)
    def _init():
        acc_ref[...] = jnp.zeros_like(acc_ref)

    x = x_ref[...].astype(jnp.float32)           # explicit f32 up-cast (bf16-safe)
    w = w_ref[...].astype(jnp.float32)           # (1, Dp) -> broadcasts over (bm, bs)
    y = jnp.maximum(x * w, 0.0)                  # relu(w * x) on the VPU, lane-dense

    if mask_seq_tail:
        # Ragged last sequence tile: rows with global packed index >= sg_valid are
        # out-of-bounds reads (unspecified values) -> force them to exactly 0.
        seq_idx = k * bs + lax.broadcasted_iota(jnp.int32, (1, bs, 1), 1)
        y = jnp.where(seq_idx < sg_valid, y, 0.0)

    acc_ref[...] += jnp.sum(y, axis=1)           # partial sequence sum (f32)

    @pl.when(k == pl.num_programs(1) - 1)
    def _finalize():
        out = jnp.dot(acc_ref[...], wl_ref[...],
                      preferred_element_type=jnp.float32)   # (bm, Dop) on the MXU
        o_ref[...] = (out + b_ref[...]).astype(o_ref.dtype)


def _round_up(a, b):
    return ((a + b - 1) // b) * b


def _chip_budgets():
    """(vmem_limit_bytes, default bs_max) tuned per TPU generation.

    v5e / v6e have 128 MiB of physical VMEM per TensorCore -> 64 MiB scoped limit
    and sequence tiles up to 256 packed rows. v7x has only 64 MiB per TensorCore,
    so stay at a 32 MiB limit and bs <= 128. Unknown chips get the safe budget.
    """
    try:
        kind = jax.devices()[0].device_kind.lower()
    except Exception:
        kind = ""
    if any(tag in kind for tag in ("v5 lite", "v5e", "v5litepod", "v6 lite", "v6e")):
        return 64 * 1024 * 1024, 256
    return 32 * 1024 * 1024, 128


def repeat_linear(x, w, linear_w, linear_b, *, bm_max=128, bs_max=None,
                  stream_dtype=None):
    """x: (B, S, D_in); w: (D_in,); linear_w: (D_out, D_in); linear_b: (D_out,).

    stream_dtype: optionally cast x once at the boundary (e.g. jnp.bfloat16) to halve
    HBM traffic of the dominant operand; in-kernel accumulation stays f32.
    """
    B, S, D_in = x.shape
    D_out = linear_w.shape[0]
    out_dtype = x.dtype

    vmem_limit_bytes, chip_bs_max = _chip_budgets()
    if bs_max is None:
        bs_max = chip_bs_max

    # ---- lane packing of the feature axis --------------------------------
    if D_in < 128 and 128 % D_in == 0:
        pack = 128 // D_in
    else:
        pack = 1
    Dp = _round_up(pack * D_in, 128)             # lane-dense feature width

    if pack > 1:
        S_pad = _round_up(S, pack)
        if S_pad != S:
            # Minimal pad, only when S % pack != 0; padded rows are exact zeros and
            # contribute nothing through relu(w*x) / the sum.
            x = jnp.pad(x, ((0, 0), (0, S_pad - S), (0, 0)))
        Sg = S_pad // pack
        xp = x.reshape(B, Sg, Dp)                # contiguous reshape: free (bitcast)
    else:
        Sg = S
        if Dp != D_in:
            # Rare path (D_in not a multiple of 128): keep loads/stores unmasked.
            xp = jnp.pad(x, ((0, 0), (0, 0), (0, Dp - D_in)))
        else:
            xp = x

    if stream_dtype is not None and xp.dtype != jnp.dtype(stream_dtype):
        xp = xp.astype(stream_dtype)             # stream the big operand narrow
    x_itemsize = jnp.dtype(xp.dtype).itemsize

    # ---- tile sizes (no host-side padding of B or Sg) ---------------------
    if B <= 8:
        bm = B                                   # full-extent block (always legal)
    else:
        # Keep at least two batch blocks so both v7x TensorCores get work.
        bm = min(bm_max, _round_up(pl.cdiv(B, 2), 8))
    n_bi = pl.cdiv(B, bm)

    # Sequence tile: as big as the scoped-VMEM budget allows (double-buffered x block
    # kept within ~1/2 of the limit), capped per generation; multiple of 16 for bf16.
    align = 16 if x_itemsize < 4 else 8
    bytes_cap = ((vmem_limit_bytes // 4) // (bm * Dp * x_itemsize)) // align * align
    bs_cap = max(align, min(bs_max, max(align, bytes_cap)))
    bs = Sg if Sg <= bs_cap else bs_cap
    n_k = pl.cdiv(Sg, bs)
    mask_seq_tail = (Sg % bs) != 0

    Dop = _round_up(D_out, 128)                  # lane-dense output (unmasked stores)

    # ---- small resident operands (built once on host, tiny) ---------------
    w_p = jnp.zeros((1, Dp), jnp.float32).at[0, :pack * D_in].set(
        jnp.tile(w.astype(jnp.float32), pack))
    # Linear weight: transpose, stack `pack` copies vertically (intra-group sequence
    # sum absorbed by the K=Dp contraction), fold in the 1/S of the mean, pad to Dop.
    wl_stacked = jnp.tile(linear_w.T.astype(jnp.float32), (pack, 1)) / float(S)
    wl_p = jnp.zeros((Dp, Dop), jnp.float32).at[:pack * D_in, :D_out].set(wl_stacked)
    b_p = jnp.zeros((1, Dop), jnp.float32).at[0, :D_out].set(
        linear_b.astype(jnp.float32))

    # Advisory cost: ~3 VPU ops/element (mul, relu, accumulate) on streamed elements,
    # one (bm x Dp)@(Dp x Dop) matmul per batch tile, true HBM bytes of the operands.
    streamed = n_bi * bm * n_k * bs * Dp
    cost = pl.CostEstimate(
        flops=3 * streamed + 2 * n_bi * bm * Dp * Dop,
        transcendentals=0,
        bytes_accessed=(xp.size * x_itemsize
                        + w_p.size * 4 + wl_p.size * 4 + b_p.size * 4
                        + B * Dop * jnp.dtype(out_dtype).itemsize),
    )

    kernel = functools.partial(repeat_linear_kernel, sg_valid=Sg, bs=bs,
                               mask_seq_tail=mask_seq_tail)

    out = pl.pallas_call(
        kernel,
        out_shape=jax.ShapeDtypeStruct((B, Dop), out_dtype),
        grid_spec=pltpu.PrefetchScalarGridSpec(
            num_scalar_prefetch=0,
            grid=(n_bi, n_k),
            in_specs=[
                pl.BlockSpec((bm, bs, Dp), lambda i, k: (i, k, 0)),   # x tiles
                # Residents below have constant index maps (fetched once); they total
                # < ~0.2 MiB so default buffering costs negligible VMEM headroom.
                pl.BlockSpec((1, Dp), lambda i, k: (0, 0)),           # w
                pl.BlockSpec((Dp, Dop), lambda i, k: (0, 0)),         # wl
                pl.BlockSpec((1, Dop), lambda i, k: (0, 0)),          # b
            ],
            out_specs=pl.BlockSpec((bm, Dop), lambda i, k: (i, 0)),
            scratch_shapes=[pltpu.VMEM((bm, Dp), jnp.float32)],
        ),
        compiler_params=pltpu.CompilerParams(
            dimension_semantics=("parallel", "arbitrary"),
            vmem_limit_bytes=vmem_limit_bytes,
        ),
        cost_estimate=cost,
    )(xp, w_p, wl_p, b_p)

    return out[:, :D_out]


def repeat_linear_ref(x, w, linear_w, linear_b):
    y = jnp.maximum(x * w[None, None, :], 0.0)
    m = jnp.mean(y, axis=1)
    return m @ linear_w.T + linear_b


if __name__ == "__main__":
    # Small shapes consistent with the module: batch=2, seq (num_steps axis)=8,
    # in_dim=32, out_dim=16.
    B, S, D_in, D_out = 2, 8, 32, 16

    key = jax.random.PRNGKey(0)
    kx, kw, kwl, kb = jax.random.split(key, 4)

    x = jax.random.normal(kx, (B, S, D_in), dtype=jnp.float32)

    # Deterministic parameter init (mirrors shapes from __init__):
    # self.w = randn(in_dim); nn.Linear(in_dim, out_dim) -> weight (out,in), bias (out,)
    w = jax.random.normal(kw, (D_in,), dtype=jnp.float32)
    bound = 1.0 / float(D_in) ** 0.5
    linear_w = jax.random.uniform(kwl, (D_out, D_in), minval=-bound, maxval=bound,
                                  dtype=jnp.float32)
    linear_b = jax.random.uniform(kb, (D_out,), minval=-bound, maxval=bound,
                                  dtype=jnp.float32)

    out = repeat_linear(x, w, linear_w, linear_b)
    out = jax.block_until_ready(out)

    ref = repeat_linear_ref(x, w, linear_w, linear_b)
    assert out.shape == (B, D_out)
    assert jnp.allclose(out, ref, atol=1e-5, rtol=1e-5), "mismatch vs reference"

    print("KERNEL_OK")
</pallas_src>

<mosaic_0001>
module attributes {stable_mosaic.version = 11 : i64} {
  func.func @repeat_linear_kernel(%arg0: i32, %arg1: i32, %arg2: memref<2x2x128xf32, #tpu.memory_space<vmem>>, %arg3: memref<1x128xf32, #tpu.memory_space<vmem>>, %arg4: memref<128x128xf32, #tpu.memory_space<vmem>>, %arg5: memref<1x128xf32, #tpu.memory_space<vmem>>, %arg6: memref<2x128xf32, #tpu.memory_space<vmem>>, %arg7: memref<2x128xf32, #tpu.memory_space<vmem>>) attributes {dimension_semantics = [#tpu.dimension_semantics<parallel>, #tpu.dimension_semantics<arbitrary>], iteration_bounds = array<i64: 1, 1>, scalar_prefetch = 0 : i64, scratch_operands = 1 : i64, tpu.core_type = #tpu.core_type<tc>, window_params = [{transform_indices = @transform_0, window_bounds = array<i64: 2, 2, 128>}, {pipeline_mode = #tpu.pipeline_mode<synchronous>, transform_indices = @transform_1, window_bounds = array<i64: 1, 128>}, {pipeline_mode = #tpu.pipeline_mode<synchronous>, transform_indices = @transform_2, window_bounds = array<i64: 128, 128>}, {pipeline_mode = #tpu.pipeline_mode<synchronous>, transform_indices = @transform_3, window_bounds = array<i64: 1, 128>}, {transform_indices = @transform_4, window_bounds = array<i64: 2, 128>}]} {
    %c0_i32 = arith.constant 0 : i32
    %0 = arith.cmpi eq, %arg1, %c0_i32 : i32
    %1 = arith.extui %0 : i1 to i32
    %c0_i32_0 = arith.constant 0 : i32
    %2 = arith.cmpi ne, %1, %c0_i32_0 : i32
    scf.if %2 {
      %cst_12 = arith.constant 0.000000e+00 : f32
      %17 = vector.broadcast %cst_12 : f32 to vector<2x128xf32>
      %c0_13 = arith.constant 0 : index
      %c0_14 = arith.constant 0 : index
      %18 = vector.load %arg7[%c0_13, %c0_14] : memref<2x128xf32, #tpu.memory_space<vmem>>, vector<2x128xf32>
      tpu.vector_store %arg7[%c0_13, %c0_14], %17 {strides = array<i32>} : memref<2x128xf32, #tpu.memory_space<vmem>>, vector<2x128xf32>,
    } else {
    }
    %c0 = arith.constant 0 : index
    %c0_1 = arith.constant 0 : index
    %c0_2 = arith.constant 0 : index
    %3 = vector.load %arg2[%c0, %c0_1, %c0_2] : memref<2x2x128xf32, #tpu.memory_space<vmem>>, vector<2x2x128xf32>
    %c0_3 = arith.constant 0 : index
    %c0_4 = arith.constant 0 : index
    %4 = vector.load %arg3[%c0_3, %c0_4] : memref<1x128xf32, #tpu.memory_space<vmem>>, vector<1x128xf32>
    %5 = vector.shape_cast %4 : vector<1x128xf32> to vector<1x1x128xf32>
    %6 = vector.broadcast %5 : vector<1x1x128xf32> to vector<2x2x128xf32>
    %7 = arith.mulf %3, %6 : vector<2x2x128xf32>
    %cst = arith.constant 0.000000e+00 : f32
    %8 = vector.broadcast %cst : f32 to vector<2x2x128xf32>
    %9 = arith.maximumf %7, %8 : vector<2x2x128xf32>
    %c0_5 = arith.constant 0 : index
    %c0_6 = arith.constant 0 : index
    %10 = vector.load %arg7[%c0_5, %c0_6] : memref<2x128xf32, #tpu.memory_space<vmem>>, vector<2x128xf32>
    %cst_7 = arith.constant dense<0.000000e+00> : vector<2x128xf32>
    %11 = vector.multi_reduction <add>, %9, %cst_7 [1] : vector<2x2x128xf32> to vector<2x128xf32>
    %12 = arith.addf %10, %11 : vector<2x128xf32>
    %c0_8 = arith.constant 0 : index
    %c0_9 = arith.constant 0 : index
    %13 = vector.load %arg7[%c0_8, %c0_9] : memref<2x128xf32, #tpu.memory_space<vmem>>, vector<2x128xf32>
    tpu.vector_store %arg7[%c0_8, %c0_9], %12 {strides = array<i32>} : memref<2x128xf32, #tpu.memory_space<vmem>>, vector<2x128xf32>,
    %c0_i32_10 = arith.constant 0 : i32
    %14 = arith.cmpi eq, %arg1, %c0_i32_10 : i32
    %15 = arith.extui %14 : i1 to i32
    %c0_i32_11 = arith.constant 0 : i32
    %16 = arith.cmpi ne, %15, %c0_i32_11 : i32
    scf.if %16 {
      %c0_12 = arith.constant 0 : index
      %c0_13 = arith.constant 0 : index
      %17 = vector.load %arg7[%c0_12, %c0_13] : memref<2x128xf32, #tpu.memory_space<vmem>>, vector<2x128xf32>
      %c0_14 = arith.constant 0 : index
      %c0_15 = arith.constant 0 : index
      %18 = vector.load %arg4[%c0_14, %c0_15] : memref<128x128xf32, #tpu.memory_space<vmem>>, vector<128x128xf32>
      %cst_16 = arith.constant dense<0.000000e+00> : vector<2x128xf32>
      %19 = tpu.matmul %17, %18, %cst_16 {dimension_numbers = #tpu.dot_dimension_numbers<[1], [0], [0], [1], [0, 0, 1, 1], [], []>} : vector<2x128xf32>, vector<128x128xf32>, vector<2x128xf32> -> vector<2x128xf32>
      %c0_17 = arith.constant 0 : index
      %c0_18 = arith.constant 0 : index
      %20 = vector.load %arg5[%c0_17, %c0_18] : memref<1x128xf32, #tpu.memory_space<vmem>>, vector<1x128xf32>
      %21 = vector.broadcast %20 : vector<1x128xf32> to vector<2x128xf32>
      %22 = arith.addf %19, %21 : vector<2x128xf32>
      %c0_19 = arith.constant 0 : index
      %c0_20 = arith.constant 0 : index
      %23 = vector.load %arg6[%c0_19, %c0_20] : memref<2x128xf32, #tpu.memory_space<vmem>>, vector<2x128xf32>
      tpu.vector_store %arg6[%c0_19, %c0_20], %22 {strides = array<i32>} : memref<2x128xf32, #tpu.memory_space<vmem>>, vector<2x128xf32>,
    } else {
    }
    return
  }
  func.func @transform_0(%arg0: i32, %arg1: i32) -> (i32, i32, i32) {
    %c0_i32 = arith.constant 0 : i32
    %c0_i32_0 = arith.constant 0 : i32
    return %arg0, %arg1, %c0_i32 : i32, i32, i32
  }
  func.func @transform_1(%arg0: i32, %arg1: i32) -> (i32, i32) {
    %c0_i32 = arith.constant 0 : i32
    %c0_i32_0 = arith.constant 0 : i32
    %c0_i32_1 = arith.constant 0 : i32
    return %c0_i32, %c0_i32_0 : i32, i32
  }
  func.func @transform_2(%arg0: i32, %arg1: i32) -> (i32, i32) {
    %c0_i32 = arith.constant 0 : i32
    %c0_i32_0 = arith.constant 0 : i32
    %c0_i32_1 = arith.constant 0 : i32
    return %c0_i32, %c0_i32_0 : i32, i32
  }
  func.func @transform_3(%arg0: i32, %arg1: i32) -> (i32, i32) {
    %c0_i32 = arith.constant 0 : i32
    %c0_i32_0 = arith.constant 0 : i32
    %c0_i32_1 = arith.constant 0 : i32
    return %c0_i32, %c0_i32_0 : i32, i32
  }
  func.func @transform_4(%arg0: i32, %arg1: i32) -> (i32, i32) {
    %c0_i32 = arith.constant 0 : i32
    %c0_i32_0 = arith.constant 0 : i32
    return %arg0, %c0_i32 : i32, i32
  }
}

</mosaic_0001>

<bundles_post_ra>
// kernel: tpu_custom_call.1
= control target key start
LH: loop header
LB: loop body
LE: loop exit
PB: predicated region body
PF: predicated region fallthrough
CT: control target
= control target key end

     0   :  { %9 = vsyncpa [#allocation4], 0  ;;  %s446_s0 = inlined_call_operand.hbm [shape: f32[2,2,128], index: 0, kind: input, shape index: {}]   ;;  %s447_s1 = inlined_call_operand.vmem [shape: f32[1,128], index: 1, kind: input, shape index: {}]   ;;  %s448_s2 = inlined_call_operand.hbm [shape: f32[128,128], index: 2, kind: input, shape index: {}]   ;;  %s449_s3 = inlined_call_operand.vmem [shape: f32[1,128], index: 3, kind: input, shape index: {}]   ;;  %s450_s4 = inlined_call_operand.hbm [shape: f32[2,128], index: 4, kind: output, shape index: {}]  }
   0x1   :  { %10 = vsyncpa [#allocation7], 0 }
   0x2   :  { %11 = vsyncpa [#allocation5], 0  ;;  %s361_s15 = smov [#allocation3]   ;;  %s289_s19 = scalar_lea.hbm %s446_s0, 64 }
   0x3   :  { %s17_s16 = sshll.u32 %s361_s15, 4  ;;  %p290_p0 = scmp.ne.s32.totalorder %s446_s0, %s289_s19  ;;  %s18_s16 = int_to_ptr.vmem [resolvable:$true] %s17_s16 }
   0x4   :  { %p293_p1 = scmp.lt.u32.totalorder %s289_s19, %s446_s0 }
   0x6   :  { %p295_p2 = pnand %p293_p1, %p290_p0 }
   0x8   :  { %298 = shalt.err (!%p295_p2)
}
   0x9   :  { %s299_s24 = scalar_lea.vmem %s18_s16, 64  ;;  %p304_p4 = scmp.lt.s32.totalorder %s18_s16, %s18_s16 }
   0xa   :  { %p300_p3 = scmp.ne.s32.totalorder %s18_s16, %s299_s24  ;;  %p305_p5 = scmp.lt.s32.totalorder %s299_s24, %s299_s24 }
   0xc   :  { %p306_p6 = por %p305_p5, %p304_p4 }
   0xe   :  { %p307_p7 = pnand %p306_p6, %p300_p3 }
  0x10   :  { %310 = shalt.err (!%p307_p7)
}
  0x11   :  { %s362_s25 = smov 32   ;;  %s363_s26 = smov 2  }
  0x12   :  { %23 = dma.hbm_to_vmem [thread:$0]  %s446_s0, 64, %s18_s16, [#allocation4], %s362_s25, %s362_s25, %s363_s26  }
  0x13   :  { %s364_s29 = smov [#allocation6]   ;;  %s311_s7 = scalar_lea.hbm %s448_s2, 2048 }
  0x14   :  { %s31_s30 = sshll.u32 %s364_s29, 4  ;;  %p312_p8 = scmp.ne.s32.totalorder %s448_s2, %s311_s7  ;;  %s32_s30 = int_to_ptr.vmem [resolvable:$true] %s31_s30 }
  0x15   :  { %p315_p9 = scmp.lt.u32.totalorder %s311_s7, %s448_s2 }
  0x17   :  { %p317_p10 = pnand %p315_p9, %p312_p8 }
  0x19   :  { %320 = shalt.err (!%p317_p10)
}
  0x1a   :  { %s321_s12 = scalar_lea.vmem %s32_s30, 2048  ;;  %p326_p12 = scmp.lt.s32.totalorder %s32_s30, %s32_s30 }
  0x1b   :  { %p322_p11 = scmp.ne.s32.totalorder %s32_s30, %s321_s12  ;;  %p327_p13 = scmp.lt.s32.totalorder %s321_s12, %s321_s12 }
  0x1d   :  { %p328_p0 = por %p327_p13, %p326_p12 }
  0x1f   :  { %p329_p1 = pnand %p328_p0, %p322_p11 }
  0x21   :  { %332 = shalt.err (!%p329_p1)
}
  0x22   :  { %s365_s0 = smov 128   ;;  %s366_s13 = smov 8  }
  0x23   :  { %37 = dma.hbm_to_vmem [thread:$0]  %s448_s2, 2048, %s32_s30, [#allocation7], %s365_s0, %s365_s0, %s366_s13  }
  0x24   :  { %355 = dma.done.wait [#allocation4], 64  }
  0x25   :  { %356 = vsyncadd [#allocation4], 4294967232 }
  0x26   :  { %357 = dma.done.wait [#allocation7], 2048  }
  0x27   :  { %358 = vsyncadd [#allocation7], 4294965248  ;;  %v367_v0 = vmov 0.0|0.0   ;;  %v368_v1 = vmov 0.0   ;;  %vm369_vm0 = vmmov 0   ;;  %v91_v2 = vld [vmem:[#allocation6] sm:$0xff] }
  0x28   :  { %255 = vmatprep.subr.bf16.mxu0 %v367_v0  ;;  %50 = vst [vmem:[#allocation2] sm:$0x3] %v368_v1  ;;  %252 = vmatprep.mubr.msk.f32.mxu0 %vm369_vm0, %v368_v1  ;;  %v92_v3 = vld [vmem:[#allocation6 + $0x8] sm:$0xff]  ;;  %v93_v4 = vld [vmem:[#allocation6 + $0x10] sm:$0xff]  ;;  %v94_v6 = vld [vmem:[#allocation6 + $0x18] sm:$0xff]  ;;  %vm65_vm1 = vcmask 1041408  }
  0x29   :  { %v256_v5 = vpack.c.bf16 %v92_v3, %v91_v2  ;;  %v259_v7 = vpack.c.bf16 %v94_v6, %v93_v4  ;;  %v95_v8 = vld [vmem:[#allocation6 + $0x20] sm:$0xff]  ;;  %v96_v9 = vld [vmem:[#allocation6 + $0x28] sm:$0xff]  ;;  %v51_v10 = vld [vmem:[#allocation3] sm:$0x3]  ;;  %vm82_vm2 = vcmask 1041409   ;;  %s370_s18 = smov [#allocation8]  }
  0x2a   :  { %v52_v11 = vld [vmem:[#allocation3 + $0x2] sm:$0x3]  ;;  %v201_v12 = vld [vmem:[%s447_s1] ss:$0 sm:$0xff]  ;;  %v262_v13 = vpack.c.bf16 %v96_v9, %v95_v8  ;;  %v97_v16 = vld [vmem:[#allocation6 + $0x30] sm:$0xff]  ;;  %s191_s19 = sshll.u32 %s370_s18, 4  ;;  %s192_s19 = int_to_ptr.vmem [resolvable:$true] %s191_s19 }
  0x2b   :  { %257 = vmatpush3.bf16.msra.mxu0 %v256_v5  ;;  %v60_v14 = vmul.f32 %v201_v12, %v51_v10  ;;  %v61_v15 = vmul.f32 %v201_v12, %v52_v11  ;;  %v98_v17 = vld [vmem:[#allocation6 + $0x38] sm:$0xff]  ;;  %v99_v23 = vld [vmem:[#allocation6 + $0x40] sm:$0xff]  ;;  %v100_v24 = vld [vmem:[#allocation6 + $0x48] sm:$0xff]  ;;  %s333_s20 = scalar_lea.vmem %s192_s19, 32  ;;  %p338_p3 = scmp.lt.s32.totalorder %s192_s19, %s192_s19 }
  0x2c   :  { %258 = vmatprep.subr.bf16.mxu0 %v367_v0  ;;  %v265_v20 = vpack.c.bf16 %v98_v17, %v97_v16  ;;  %v268_v29 = vpack.c.bf16 %v100_v24, %v99_v23  ;;  %v101_v30 = vld [vmem:[#allocation6 + $0x50] sm:$0xff]  ;;  %v102_v31 = vld [vmem:[#allocation6 + $0x58] sm:$0xff]  ;;  %v103_v37 = vld [vmem:[#allocation6 + $0x60] sm:$0xff]  ;;  %p334_p2 = scmp.ne.s32.totalorder %s192_s19, %s333_s20  ;;  %p339_p4 = scmp.lt.s32.totalorder %s333_s20, %s333_s20 }
  0x2d   :  { %v62_v18 = vmax.f32 %v60_v14, 0.0  ;;  %v63_v19 = vmax.f32 %v61_v15, 0.0  ;;  %v271_v36 = vpack.c.bf16 %v102_v31, %v101_v30  ;;  %v104_v38 = vld [vmem:[#allocation6 + $0x68] sm:$0xff]  ;;  %v105_v45 = vld [vmem:[#allocation6 + $0x70] sm:$0xff]  ;;  %v106_v46 = vld [vmem:[#allocation6 + $0x78] sm:$0xff] }
  0x2e   :  { %v274_v44 = vpack.c.bf16 %v104_v38, %v103_v37  ;;  %v277_v49 = vpack.c.bf16 %v106_v46, %v105_v45  ;;  %v202_v51 = vld [vmem:[%s449_s3] ss:$0 sm:$0xff]  ;;  %p340_p5 = por %p339_p4, %p338_p3 }
  0x2f   :  { %260 = vmatpush3.bf16.msra.mxu0 %v259_v7  ;;  %v66_v21 = vsel %vm65_vm1, %v62_v18, 0.0  ;;  %v73_v22 = vsel %vm65_vm1, %v63_v19, 0.0  ;;  %v64_v41 = vld [vmem:[#allocation2] sm:$0x3] }
  0x30   :  { %261 = vmatprep.subr.bf16.mxu0 %v367_v0  ;;  %v67_v25 = vrot.slane %v66_v21, 4  ;;  %v74_v26 = vrot.slane %v73_v22, 4  ;;  %p341_p6 = pnand %p340_p5, %p334_p2 }
  0x32   :  { %v68_v27 = vadd.f32 %v67_v25, %v66_v21  ;;  %v75_v28 = vadd.f32 %v74_v26, %v73_v22 }
  0x33   :  { %263 = vmatpush3.bf16.msra.mxu0 %v262_v13 }
  0x34   :  { %264 = vmatprep.subr.bf16.mxu0 %v367_v0  ;;  %v69_v32 = vrot.slane %v68_v27, 2  ;;  %v76_v33 = vrot.slane %v75_v28, 2 }
  0x36   :  { %v70_v34 = vadd.f32 %v69_v32, %v68_v27  ;;  %v77_v35 = vadd.f32 %v76_v33, %v75_v28 }
  0x37   :  { %266 = vmatpush3.bf16.msra.mxu0 %v265_v20 }
  0x38   :  { %267 = vmatprep.subr.bf16.mxu0 %v367_v0  ;;  %v71_v39 = vrot.slane %v70_v34, 1  ;;  %v78_v40 = vrot.slane %v77_v35, 1 }
  0x3a   :  { %v72_v42 = vadd.f32 %v71_v39, %v70_v34  ;;  %v79_v43 = vadd.f32 %v78_v40, %v77_v35 }
  0x3b   :  { %269 = vmatpush3.bf16.msra.mxu0 %v268_v29 }
  0x3c   :  { %270 = vmatprep.subr.bf16.mxu0 %v367_v0  ;;  %v83_v47 = vsel %vm82_vm2, %v79_v43, %v72_v42 }
  0x3d   :  { %v85_v48 = vadd.f32 %v83_v47, %v64_v41 }
  0x3f   :  { %272 = vmatpush3.bf16.msra.mxu0 %v271_v36  ;;  %86 = vst [vmem:[#allocation2] sm:$0x3] %v85_v48 }
  0x40   :  { %273 = vmatprep.subr.bf16.mxu0 %v367_v0 }
  0x43   :  { %275 = vmatpush3.bf16.msra.mxu0 %v274_v44 }
  0x44   :  { %276 = vmatprep.subr.bf16.mxu0 %v367_v0 }
  0x46   :  { %v90_v50 = vld [vmem:[#allocation2] sm:$0x3] }
  0x47   :  { %278 = vmatpush3.bf16.msra.mxu0 %v277_v49 }
  0x4a   :  { %253 = vmatmul.mubr.f32.vlgmr.msra.gmra.mrb[0].mxu0 %v90_v50 }
 0x11d   :  { %v180_v52 = vpop.f32.mrb[0].mxu0 }
 0x11e   :  { %v181_v53 = vadd.f32 %v202_v51, %v180_v52  ;;  %v254_v54 = vpop.f32.mrb[1].mxu0 }
 0x120   :  { %184 = vst [vmem:[#allocation8] sm:$0x3] %v181_v53 }
 0x121   :  { %344 = shalt.err (!%p341_p6)
}
 0x122   :  { %s345_s23 = scalar_lea.hbm %s450_s4, 32 }
 0x123   :  { %p346_p7 = scmp.ne.s32.totalorder %s450_s4, %s345_s23  ;;  %p349_p8 = scmp.lt.u32.totalorder %s345_s23, %s450_s4 }
 0x125   :  { %p351_p9 = pnand %p349_p8, %p346_p7 }
 0x127   :  { %354 = shalt.err (!%p351_p9)
}
 0x128   :  { %194 = dma.vmem_to_hbm [thread:$0]  %s192_s19, 32, %s450_s4, [#allocation5]  }
 0x129   :  { %359 = dma.done.wait [#allocation5], 32  }
 0x12a   :  { %360 = vsyncadd [#allocation5], 4294967264 }
 0x12b   :  { %198 = vsyncpa [#allocation4], 1 }
 0x12c   :  { %199 = vsyncpa [#allocation7], 1 }
 0x12d   :  { %200 = vsyncpa [#allocation5], 1 }

</bundles_post_ra>
